<compile_context>
chip_gen: v5e
topology: v5e:2x2
jax: 0.10.0
libtpu: 0.0.40
codegen_flags: <defaults>
</compile_context>

<pallas_src>
import jax
import jax.numpy as jnp
from jax.experimental import pallas as pl
from jax.experimental.pallas import tpu as pltpu

NUM_CLUSTERS = 18
DIM = 512
ALPHA = 10.0
K_PAD = 128          # cluster axis padded to a full lane tile
NEG_BIG = -1e30      # finite "minus infinity" for padded clusters (exp -> 0 exactly)


def _view_center_kernel(x_ref, w_ref, cb_ref, cent_ref, bias_ref,
                        vlad_ref, ob_ref):
    x = x_ref[0]                                                        # (L, C) bf16

    # 1x1 conv == matmul over channels on the lane-padded cluster axis
    # (bf16 MXU inputs, f32 accumulation).
    logits = jnp.dot(x, w_ref[...],
                     preferred_element_type=jnp.float32) + cb_ref[...]  # (L, 128)

    # Softmax over (padded) clusters.  Padded lanes carry bias -1e30 -> exp == 0,
    # so the padded softmax is exact.  Divide goes to the EUP via approx reciprocal.
    m = jnp.max(logits, axis=-1, keepdims=True)
    e = jnp.exp(logits - m)
    a = e * pl.reciprocal(jnp.sum(e, axis=-1, keepdims=True), approx=True)
    a_bf = a.astype(jnp.bfloat16)                                       # (L, 128)

    # axk[kp,c] = sum_l a[l,kp] * x[l,c];  asum[kp] = sum_l a[l,kp] via a tiny MXU
    # push against a ones column (keeps the XLU free of sublane reduce + relayout).
    axk = jax.lax.dot_general(a_bf, x, (((0,), (0,)), ((), ())),
                              preferred_element_type=jnp.float32)       # (128, C)
    ones_l = jnp.ones((x.shape[0], 1), jnp.bfloat16)
    asum = jax.lax.dot_general(a_bf, ones_l, (((0,), (0,)), ((), ())),
                               preferred_element_type=jnp.float32)      # (128, 1)

    k = vlad_ref.shape[1]                                               # real K (=18)
    vlad = axk[:k, :] - cent_ref[...] * asum[:k, :]                     # (K, C)

    # F.normalize(p=2, dim=-1): v / max(||v||, 1e-12) == v * rsqrt(max(sumsq, 1e-24)).
    sumsq = jnp.sum(vlad * vlad, axis=-1, keepdims=True)
    vlad = vlad * jax.lax.rsqrt(jnp.maximum(sumsq, 1e-24))
    vlad_ref[0] = vlad.astype(vlad_ref.dtype)

    # out_bias[(h q), kp] = sum_l bias[(h q), l] * a[l, kp]
    # -> one flattened, lane-dense (H*Lq, L) x (L, 128) MXU push, unmasked 128-wide store.
    ob = jnp.dot(bias_ref[0], a_bf, preferred_element_type=jnp.float32)  # (H*Lq, 128)
    ob_ref[0] = ob.astype(ob_ref.dtype)


def get_view_center(x, bias, mask, weight, conv_bias, centroids):
    N, L, C = x.shape
    _, H, Lq, _ = bias.shape
    K = centroids.shape[0]

    # Lane-pad the cluster axis (K -> 128) and cast MXU operands to bf16 at the caller.
    w_bf = (jnp.zeros((C, K_PAD), jnp.bfloat16)
            .at[:, :K].set(weight.astype(jnp.bfloat16)))
    cb_pad = (jnp.full((1, K_PAD), NEG_BIG, jnp.float32)
              .at[0, :K].set(conv_bias.astype(jnp.float32)))
    x_bf = x.astype(jnp.bfloat16)
    bias_bf = bias.reshape(N, H * Lq, L).astype(jnp.bfloat16)
    cent_f32 = centroids.astype(jnp.float32)

    vlad, ob_pad = pl.pallas_call(
        _view_center_kernel,
        out_shape=(jax.ShapeDtypeStruct((N, K, C), jnp.float32),
                   jax.ShapeDtypeStruct((N, H * Lq, K_PAD), jnp.float32)),
        grid=(N,),
        in_specs=[
            pl.BlockSpec((1, L, C), lambda n: (n, 0, 0)),           # x (bf16)
            pl.BlockSpec((C, K_PAD), lambda n: (0, 0)),             # conv weight (bf16, resident)
            pl.BlockSpec((1, K_PAD), lambda n: (0, 0)),             # conv bias (f32, resident)
            pl.BlockSpec((K, C), lambda n: (0, 0)),                 # centroids (f32, resident)
            pl.BlockSpec((1, H * Lq, L), lambda n: (n, 0, 0)),      # attn bias (bf16)
        ],
        out_specs=(
            pl.BlockSpec((1, K, C), lambda n: (n, 0, 0)),           # vlad: C=512 lane-dense
            pl.BlockSpec((1, H * Lq, K_PAD), lambda n: (n, 0, 0)),  # out_bias: 128 lane-dense
        ),
        # Keep the batch axis "parallel": on v7x the two TensorCores split it.  (On
        # single-TC v5e/v6e with tiny N, folding the batch into one step would amortize
        # the ~0.35us/step overhead; the grid form is kept for cross-generation code.)
        # For production-scale L, add an inner "arbitrary" L axis with VMEM accumulators.
        compiler_params=pltpu.CompilerParams(
            dimension_semantics=("parallel",)),
    )(x_bf, w_bf, cb_pad, cent_f32, bias_bf)

    out_bias = ob_pad.reshape(N, H, Lq, K_PAD)[..., :K].astype(bias.dtype)
    vlad = vlad.astype(x.dtype)

    # Mask concatenation is pure glue (no compute): append K always-unmasked slots.
    cluster_mask = jnp.zeros((N, 1, mask.shape[2], K), dtype=mask.dtype)
    out_mask = jnp.concatenate([mask, cluster_mask], axis=-1)
    return vlad, out_bias, out_mask


if __name__ == "__main__":
    key = jax.random.PRNGKey(0)
    k1, k2, k3, k4 = jax.random.split(key, 4)

    N, L, C, K, H, Lq = 2, 8, DIM, NUM_CLUSTERS, 2, 8

    # Deterministic parameter init mirroring GetViewCenter.__init__ / _init_params
    centroids = 0.1 * jax.random.uniform(k1, (K, C), dtype=jnp.float32)
    weight = (2.0 * ALPHA * centroids).T                       # (C, K) == conv weight^T
    conv_bias = -ALPHA * jnp.linalg.norm(centroids, axis=1)    # (K,)

    x = jax.random.normal(k2, (N, L, C), dtype=jnp.float32)
    bias = jax.random.normal(k3, (N, H, Lq, L), dtype=jnp.float32)
    mask = jax.random.bernoulli(k4, 0.5, (N, 1, Lq, L))

    out, out_bias, out_mask = get_view_center(x, bias, mask,
                                              weight, conv_bias, centroids)
    jax.block_until_ready((out, out_bias, out_mask))

    # Pure-JAX reference.  The kernel feeds bf16 operands to the MXU (with f32
    # accumulation), so the reference is built from the same bf16-rounded inputs and
    # run at HIGHEST precision -- an apples-to-apples check of the kernel's math.
    hi = jax.lax.Precision.HIGHEST
    x32 = x.astype(jnp.bfloat16).astype(jnp.float32)
    w32 = weight.astype(jnp.bfloat16).astype(jnp.float32)
    b32 = bias.astype(jnp.bfloat16).astype(jnp.float32)

    logits = jnp.einsum('nlc,ck->nlk', x32, w32, precision=hi) + conv_bias
    a = jax.nn.softmax(logits, axis=-1)
    vlad_ref = (jnp.einsum('nlk,nlc->nkc', a, x32, precision=hi)
                - centroids[None] * jnp.sum(a, axis=1)[..., None])
    vlad_ref = vlad_ref / jnp.maximum(
        jnp.linalg.norm(vlad_ref, axis=-1, keepdims=True), 1e-12)
    ob_ref = jnp.einsum('nhql,nlk->nhqk', b32, a, precision=hi)

    assert out.shape == (N, K, C)
    assert out_bias.shape == (N, H, Lq, K)
    assert out_mask.shape == (N, 1, Lq, L + K)
    assert jnp.allclose(out, vlad_ref, atol=2e-2, rtol=2e-2)
    assert jnp.allclose(out_bias, ob_ref, atol=2e-2, rtol=2e-2)

    print("KERNEL_OK")
</pallas_src>

<mosaic_0001>
module attributes {stable_mosaic.version = 11 : i64} {
  func.func @_view_center_kernel(%arg0: i32, %arg1: memref<1x8x512xbf16, #tpu.memory_space<vmem>>, %arg2: memref<512x128xbf16, #tpu.memory_space<vmem>>, %arg3: memref<1x128xf32, #tpu.memory_space<vmem>>, %arg4: memref<18x512xf32, #tpu.memory_space<vmem>>, %arg5: memref<1x16x8xbf16, #tpu.memory_space<vmem>>, %arg6: memref<1x18x512xf32, #tpu.memory_space<vmem>>, %arg7: memref<1x16x128xf32, #tpu.memory_space<vmem>>) attributes {dimension_semantics = [#tpu.dimension_semantics<parallel>], iteration_bounds = array<i64: 2>, scalar_prefetch = 0 : i64, scratch_operands = 0 : i64, tpu.core_type = #tpu.core_type<tc>, window_params = [{transform_indices = @transform_0, window_bounds = array<i64: 1, 8, 512>}, {pipeline_mode = #tpu.pipeline_mode<synchronous>, transform_indices = @transform_1, window_bounds = array<i64: 512, 128>}, {pipeline_mode = #tpu.pipeline_mode<synchronous>, transform_indices = @transform_2, window_bounds = array<i64: 1, 128>}, {pipeline_mode = #tpu.pipeline_mode<synchronous>, transform_indices = @transform_3, window_bounds = array<i64: 18, 512>}, {transform_indices = @transform_4, window_bounds = array<i64: 1, 16, 8>}, {transform_indices = @transform_5, window_bounds = array<i64: 1, 18, 512>}, {transform_indices = @transform_6, window_bounds = array<i64: 1, 16, 128>}]} {
    %c0 = arith.constant 0 : index
    %c0_0 = arith.constant 0 : index
    %c0_1 = arith.constant 0 : index
    %0 = vector.load %arg1[%c0, %c0_0, %c0_1] : memref<1x8x512xbf16, #tpu.memory_space<vmem>>, vector<1x8x512xbf16>
    %1 = vector.shape_cast %0 : vector<1x8x512xbf16> to vector<8x512xbf16>
    %c0_2 = arith.constant 0 : index
    %c0_3 = arith.constant 0 : index
    %2 = vector.load %arg2[%c0_2, %c0_3] : memref<512x128xbf16, #tpu.memory_space<vmem>>, vector<512x128xbf16>
    %cst = arith.constant dense<0.000000e+00> : vector<8x128xf32>
    %3 = tpu.matmul %1, %2, %cst {dimension_numbers = #tpu.dot_dimension_numbers<[1], [0], [0], [1], [0, 0, 1, 1], [], []>} : vector<8x512xbf16>, vector<512x128xbf16>, vector<8x128xf32> -> vector<8x128xf32>
    %c0_4 = arith.constant 0 : index
    %c0_5 = arith.constant 0 : index
    %4 = vector.load %arg3[%c0_4, %c0_5] : memref<1x128xf32, #tpu.memory_space<vmem>>, vector<1x128xf32>
    %5 = vector.broadcast %4 : vector<1x128xf32> to vector<8x128xf32>
    %6 = arith.addf %3, %5 : vector<8x128xf32>
    %cst_6 = arith.constant dense<0xFF800000> : vector<8xf32>
    %7 = vector.multi_reduction <maximumf>, %6, %cst_6 [1] : vector<8x128xf32> to vector<8xf32>
    %8 = vector.shape_cast %7 : vector<8xf32> to vector<8x1xf32>
    %9 = vector.broadcast %8 : vector<8x1xf32> to vector<8x128xf32>
    %10 = arith.subf %6, %9 : vector<8x128xf32>
    %11 = math.exp %10 : vector<8x128xf32>
    %cst_7 = arith.constant dense<0.000000e+00> : vector<8xf32>
    %12 = vector.multi_reduction <add>, %11, %cst_7 [1] : vector<8x128xf32> to vector<8xf32>
    %13 = vector.shape_cast %12 : vector<8xf32> to vector<8x1xf32>
    %14 = tpu.reciprocal %13 {approx = true} : vector<8x1xf32> -> vector<8x1xf32>
    %15 = vector.broadcast %14 : vector<8x1xf32> to vector<8x128xf32>
    %16 = arith.mulf %11, %15 : vector<8x128xf32>
    %17 = arith.truncf %16 : vector<8x128xf32> to vector<8x128xbf16>
    %cst_8 = arith.constant dense<0.000000e+00> : vector<128x512xf32>
    %18 = tpu.matmul %17, %1, %cst_8 {dimension_numbers = #tpu.dot_dimension_numbers<[0], [0], [1], [1], [0, 1, 1, 1], [], []>} : vector<8x128xbf16>, vector<8x512xbf16>, vector<128x512xf32> -> vector<128x512xf32>
    %cst_9 = arith.constant 1.000000e+00 : bf16
    %19 = vector.broadcast %cst_9 : bf16 to vector<8x1xbf16>
    %cst_10 = arith.constant dense<0.000000e+00> : vector<128x1xf32>
    %20 = tpu.matmul %17, %19, %cst_10 {dimension_numbers = #tpu.dot_dimension_numbers<[0], [0], [1], [1], [0, 1, 1, 1], [], []>} : vector<8x128xbf16>, vector<8x1xbf16>, vector<128x1xf32> -> vector<128x1xf32>
    %21 = vector.extract_strided_slice %18 {offsets = [0, 0], sizes = [18, 512], strides = [1, 1]} : vector<128x512xf32> to vector<18x512xf32>
    %c0_11 = arith.constant 0 : index
    %c0_12 = arith.constant 0 : index
    %22 = vector.load %arg4[%c0_11, %c0_12] : memref<18x512xf32, #tpu.memory_space<vmem>>, vector<18x512xf32>
    %23 = vector.extract_strided_slice %20 {offsets = [0, 0], sizes = [18, 1], strides = [1, 1]} : vector<128x1xf32> to vector<18x1xf32>
    %24 = vector.broadcast %23 : vector<18x1xf32> to vector<18x512xf32>
    %25 = arith.mulf %22, %24 : vector<18x512xf32>
    %26 = arith.subf %21, %25 : vector<18x512xf32>
    %27 = arith.mulf %26, %26 : vector<18x512xf32>
    %cst_13 = arith.constant dense<0.000000e+00> : vector<18xf32>
    %28 = vector.multi_reduction <add>, %27, %cst_13 [1] : vector<18x512xf32> to vector<18xf32>
    %29 = vector.shape_cast %28 : vector<18xf32> to vector<18x1xf32>
    %cst_14 = arith.constant 1.000000e-24 : f32
    %30 = vector.broadcast %cst_14 : f32 to vector<18x1xf32>
    %31 = arith.maximumf %29, %30 : vector<18x1xf32>
    %32 = math.rsqrt %31 : vector<18x1xf32>
    %33 = vector.broadcast %32 : vector<18x1xf32> to vector<18x512xf32>
    %34 = arith.mulf %26, %33 : vector<18x512xf32>
    %c0_15 = arith.constant 0 : index
    %c0_16 = arith.constant 0 : index
    %c0_17 = arith.constant 0 : index
    %35 = vector.load %arg6[%c0_15, %c0_16, %c0_17] : memref<1x18x512xf32, #tpu.memory_space<vmem>>, vector<1x18x512xf32>
    %36 = vector.shape_cast %35 : vector<1x18x512xf32> to vector<18x512xf32>
    %37 = vector.shape_cast %34 : vector<18x512xf32> to vector<1x18x512xf32>
    tpu.vector_store %arg6[%c0_15, %c0_16, %c0_17], %37 {strides = array<i32>} : memref<1x18x512xf32, #tpu.memory_space<vmem>>, vector<1x18x512xf32>,
    %c0_18 = arith.constant 0 : index
    %c0_19 = arith.constant 0 : index
    %c0_20 = arith.constant 0 : index
    %38 = vector.load %arg5[%c0_18, %c0_19, %c0_20] : memref<1x16x8xbf16, #tpu.memory_space<vmem>>, vector<1x16x8xbf16>
    %39 = vector.shape_cast %38 : vector<1x16x8xbf16> to vector<16x8xbf16>
    %cst_21 = arith.constant dense<0.000000e+00> : vector<16x128xf32>
    %40 = tpu.matmul %39, %17, %cst_21 {dimension_numbers = #tpu.dot_dimension_numbers<[1], [0], [0], [1], [0, 0, 1, 1], [], []>} : vector<16x8xbf16>, vector<8x128xbf16>, vector<16x128xf32> -> vector<16x128xf32>
    %c0_22 = arith.constant 0 : index
    %c0_23 = arith.constant 0 : index
    %c0_24 = arith.constant 0 : index
    %41 = vector.load %arg7[%c0_22, %c0_23, %c0_24] : memref<1x16x128xf32, #tpu.memory_space<vmem>>, vector<1x16x128xf32>
    %42 = vector.shape_cast %41 : vector<1x16x128xf32> to vector<16x128xf32>
    %43 = vector.shape_cast %40 : vector<16x128xf32> to vector<1x16x128xf32>
    tpu.vector_store %arg7[%c0_22, %c0_23, %c0_24], %43 {strides = array<i32>} : memref<1x16x128xf32, #tpu.memory_space<vmem>>, vector<1x16x128xf32>,
    return
  }
  func.func @transform_0(%arg0: i32) -> (i32, i32, i32) {
    %c0_i32 = arith.constant 0 : i32
    %c0_i32_0 = arith.constant 0 : i32
    %c0_i32_1 = arith.constant 0 : i32
    return %arg0, %c0_i32, %c0_i32_0 : i32, i32, i32
  }
  func.func @transform_1(%arg0: i32) -> (i32, i32) {
    %c0_i32 = arith.constant 0 : i32
    %c0_i32_0 = arith.constant 0 : i32
    %c0_i32_1 = arith.constant 0 : i32
    return %c0_i32, %c0_i32_0 : i32, i32
  }
  func.func @transform_2(%arg0: i32) -> (i32, i32) {
    %c0_i32 = arith.constant 0 : i32
    %c0_i32_0 = arith.constant 0 : i32
    %c0_i32_1 = arith.constant 0 : i32
    return %c0_i32, %c0_i32_0 : i32, i32
  }
  func.func @transform_3(%arg0: i32) -> (i32, i32) {
    %c0_i32 = arith.constant 0 : i32
    %c0_i32_0 = arith.constant 0 : i32
    %c0_i32_1 = arith.constant 0 : i32
    return %c0_i32, %c0_i32_0 : i32, i32
  }
  func.func @transform_4(%arg0: i32) -> (i32, i32, i32) {
    %c0_i32 = arith.constant 0 : i32
    %c0_i32_0 = arith.constant 0 : i32
    %c0_i32_1 = arith.constant 0 : i32
    return %arg0, %c0_i32, %c0_i32_0 : i32, i32, i32
  }
  func.func @transform_5(%arg0: i32) -> (i32, i32, i32) {
    %c0_i32 = arith.constant 0 : i32
    %c0_i32_0 = arith.constant 0 : i32
    %c0_i32_1 = arith.constant 0 : i32
    return %arg0, %c0_i32, %c0_i32_0 : i32, i32, i32
  }
  func.func @transform_6(%arg0: i32) -> (i32, i32, i32) {
    %c0_i32 = arith.constant 0 : i32
    %c0_i32_0 = arith.constant 0 : i32
    %c0_i32_1 = arith.constant 0 : i32
    return %arg0, %c0_i32, %c0_i32_0 : i32, i32, i32
  }
}

</mosaic_0001>

<bundles_post_ra>
// kernel: tpu_custom_call.1
= control target key start
LH: loop header
LB: loop body
LE: loop exit
PB: predicated region body
PF: predicated region fallthrough
CT: control target
= control target key end

     0   :  { %s2098_s0 = inlined_call_operand.hbm [shape: bf16[2,8,512], index: 0, kind: input, shape index: {}]   ;;  %s2099_s1 = inlined_call_operand.hbm [shape: bf16[512,128], index: 1, kind: input, shape index: {}]   ;;  %s2100_s2 = inlined_call_operand.vmem [shape: f32[1,128], index: 2, kind: input, shape index: {}]   ;;  %s2101_s3 = inlined_call_operand.hbm [shape: f32[18,512], index: 3, kind: input, shape index: {}]   ;;  %s2102_s4 = inlined_call_operand.vmem [shape: bf16[2,16,8], index: 4, kind: input, shape index: {}]   ;;  %s2103_s5 = inlined_call_operand.vmem [shape: f32[2,18,512], index: 5, kind: output, shape index: {0}]   ;;  %s2104_s6 = inlined_call_operand.hbm [shape: f32[2,16,128], index: 6, kind: output, shape index: {1}]  }
   0x1   :  { %2105 = sst [smem:[#allocation12_spill]] %s2099_s1 }
   0x2   :  { %12 = vsyncpa [#allocation3], 0 }
   0x3   :  { %14 = vsyncpa [#allocation3 + $0x1], 0 }
   0x4   :  { %15 = vsyncpa [#allocation6], 0 }
   0x5   :  { %16 = vsyncpa [#allocation4], 0 }
   0x6   :  { %18 = vsyncpa [#allocation4 + $0x1], 0  ;;  %s1761_s21 = smov 0   ;;  %s1763_s22 = smov 0  }
   0x7   :  { %s1765_s23 = smov 0   ;;  %s1767_s24 = smov 0  }
   0x8 LB: > { %s2106_s1 = sld [smem:[#allocation12_spill]]  ;;  %s1785_s28 = sadd.s32 4294967295, %s1715_s24   ;;  %s1715_s24 = sphi %s1767_s24, %s2117_s24   ;;  %s1711_s23 = sphi %s1765_s23, %s2116_s23   ;;  %s1707_s22 = sphi %s1763_s22, %s2115_s22   ;;  %s1703_s21 = sphi %s1761_s21, %s2114_s21  }
   0x9   : > { %p1236_p0 = scmp.ge.s32.totalorder %s1715_s24, 1  ;;  %p45_p1 = scmp.eq.s32.totalorder %s1785_s28, 0 }
   0xa   : > { %p196_p2 = scmp.lt.s32.totalorder %s1715_s24, 3  ;;  %s1717_s30 = smov [#allocation5]  }
   0xb   : > { %s209_s7 = sshll.u32 %s1717_s30, 4  ;;  %s224_s10 = sshll.u32 %s2101_s3, 4  ;;  %s210_s7 = int_to_ptr.vmem [resolvable:$true] %s209_s7  ;;  %s225_s10 = int_to_ptr.hbm [resolvable:$true] %s224_s10 }
   0xc   : > { %p1790_p3 = pnand %p1236_p0, %p196_p2  ;;  %s1718_s11 = smov [#allocation7]  }
   0xd   : > { %s226_s12 = sshll.u32 %s1718_s11, 4  ;;  %s1719_s13 = smov 64   ;;  %s227_s12 = int_to_ptr.vmem [resolvable:$true] %s226_s12 }
   0xe   : > { %s207_s27 = sshll.u32 %s2106_s1, 4  ;;  %p1479_p4 = pneg %p1790_p3  ;;  %s208_s27 = int_to_ptr.hbm [resolvable:$true] %s207_s27 }
   0xf   : > { %s1720_s14 = smov 4   ;;  %s1721_s15 = smov 512  }
  0x10   : > { %p1480_p6 = pnand %p1479_p4, %p45_p1  ;;  %s1722_s16 = smov 32  }
  0x11   : > { %s1235_s17 = sadd.s32 4294967294, %s1715_s24   ;;  %s1804_s18 = sadd.s32 1, %s1715_s24  }
  0x12   : > { %1482 = dma.hbm_to_vmem [thread:$0]  (!%p1480_p6), %s208_s27, 4096, %s210_s7, [#allocation6], %s1719_s13, %s1719_s13, %s1720_s14  }
  0x13   : > { %1485 = dma.hbm_to_vmem [thread:$0]  (!%p1480_p6), %s225_s10, 1536, %s227_s12, [#allocation6], %s1721_s15, %s1721_s15, %s1722_s16  }
  0x14   : > { %s28_s19 = ssub.s32 %s1715_s24, %s1804_s18  ;;  %s31_s20 = sadd.s32 1, %s1711_s23 }
  0x15   : > { %p29_p7 = scmp.eq.s32.totalorder %s28_s19, 0  ;;  %p38_p8 = scmp.ne.s32.totalorder %s1711_s23, %s1707_s22 }
  0x16   : > { %p39_p9 = scmp.eq.s32.totalorder %s1715_s24, 0  ;;  %p44_p10 = scmp.ne.s32.totalorder %s1707_s22, %s1703_s21 }
  0x17   : > { %s1815_s25 = scalar_select %p29_p7, %s1711_s23, %s31_s20  }
  0x18   : > { %p1817_p11 = por %p39_p9, %p38_p8  ;;  %p1823_p12 = por %p45_p1, %p44_p10 }
  0x19   : > { %p183_p13 = scmp.eq.s32.totalorder %s1785_s28, 1  ;;  %p189_p0 = scmp.eq.s32.totalorder %s1235_s17, 1 }
  0x1a   : > { %p1496_p2 = scmp.lt.s32.totalorder %s1715_s24, 2  ;;  %s240_s30 = sand.u32 1, %s1711_s23  }
  0x1b   : > { %p1830_p4 = por %p183_p13, %p38_p8  ;;  %p1834_p6 = por %p189_p0, %p44_p10 }
  0x1c   : > { %s1240_s9 = sshll.u32 %s240_s30, 4  ;;  %s1429_s10 = sshll.u32 %s1715_s24, 4 }
  0x1d   : > { %s249_s13 = scalar_lea.hbm %s2098_s0, %s1429_s10  ;;  %s244_s14 = scalar_lea.vmem [#allocation2], %s1240_s9 }
  0x1e   : > { %s253_s15 = sshll.u32 %s244_s14, 4  ;;  %s251_s16 = sshll.u32 %s249_s13, 4  ;;  %s254_s15 = int_to_ptr.vmem [resolvable:$true] %s253_s15  ;;  %s252_s16 = int_to_ptr.hbm [resolvable:$true] %s251_s16 }
  0x1f   : > { %p1844_p7 = pnand %p1496_p2, %p1817_p11  ;;  %s241_s19 = scalar_lea.sflag [#allocation3], %s240_s30 }
  0x20   : > { %s1615_s20 = sshra.s32 %s252_s16, 4  ;;  %s1622_s11 = scalar_lea.hbm %s2098_s0, 32  ;;  %s1616_s20 = int_to_ptr.hbm [resolvable:$true] %s1615_s20 }
  0x21   : > { %s1617_s1 = scalar_lea.hbm %s1616_s20, 16  ;;  %p1619_p9 = pneg %p1844_p7 }
  0x22   : > { %p1618_p8 = scmp.ne.s32.totalorder %s1616_s20, %s1617_s1  ;;  %p1623_p11 = scmp.lt.s32.totalorder %s1616_s20, %s2098_s0 }
  0x23   : > { %p1624_p0 = scmp.lt.s32.totalorder %s1622_s11, %s1617_s1 }
  0x24   : > { %p1620_p10 = pnand %p1619_p9, %p1618_p8 }
  0x25   : > { %p1625_p2 = por %p1624_p0, %p1623_p11 }
  0x26   : > { %p1621_p13 = pneg %p1620_p10 }
  0x28   : > { %p1626_p5 = pnand %p1625_p2, %p1621_p13 }
  0x2a   : > { %1629 = shalt.err (!%p1626_p5)
}
  0x2b   : > { %1489 = dma.hbm_to_vmem [thread:$0]  (!%p1844_p7), %s252_s16, 256, %s254_s15, %s241_s19  }
  0x2c   : > { %270 = sbr.rel (%p1790_p3) target bundleno = 1137 (0x471), region = 40  ;;  %s1861_s30 = sand.u32 (!%p1790_p3), 1, %s1707_s22  }
  0x2d   : > { %s1244_s13 = sshll.u32 (!%p1790_p3), %s1861_s30, 4  ;;  %s273_s14 = scalar_lea.sflag (!%p1790_p3), [#allocation3], %s1861_s30 }
  0x2e   : > { %s1867_s1 = scalar_lea.vmem (!%p1790_p3), [#allocation2], %s1244_s13 }
  0x31   : > { %1690 = dma.done.wait (%p1823_p12), %s273_s14, 256  }
  0x32   : > { %1692 = vsyncadd (%p1823_p12), %s273_s14, 4294967040 }
  0x33   : > { %1694 = dma.done.wait (%p45_p1), [#allocation6], 5632  }
  0x34   : > { %1696 = vsyncadd (%p45_p1), [#allocation6], 4294961664  ;;  %v1454_v0 = vld [vmem:[#allocation5 + $0xb8] sm:$0xff]  ;;  %v1453_v2 = vld [vmem:[#allocation5 + $0xb0] sm:$0xff]  ;;  %vm717_vm0 = vcmask 1043456   ;;  %vm692_vm1 = vcmask 64512  }
  0x35   : > { %v1438_v1 = vld [vmem:[#allocation5 + $0x38] sm:$0xff]  ;;  %640 = vmatpush.bf16.msra.mxu3 %v1454_v0  ;;  %v1437_v4 = vld [vmem:[#allocation5 + $0x30] sm:$0xff]  ;;  %v1452_v6 = vld [vmem:[#allocation5 + $0xa8] sm:$0xff]  ;;  %p326_p1 = scmp.lt.s32.totalorder %s1785_s28, 1  ;;  %vm986_vm2 = vcmask 1041408   ;;  %s1464_s9 = sshll.u32 %s1785_s28, 4 }
  0x36   : > { %v1446_v3 = vld [vmem:[#allocation5 + $0x78] sm:$0xff]  ;;  %614 = vmatpush.bf16.msra.mxu0 %v1438_v1  ;;  %v1445_v5 = vld [vmem:[#allocation5 + $0x70] sm:$0xff]  ;;  %v1436_v7 = vld [vmem:[#allocation5 + $0x28] sm:$0xff]  ;;  %s325_s11 = scalar_lea.vmem [#allocation8], %s1244_s13  ;;  %s1102_s14 = scalar_lea.hbm %s2104_s6, %s1464_s9 }
  0x37   : > { %627 = vmatpush.bf16.msra.mxu1 %v1446_v3  ;;  %v1444_v8 = vld [vmem:[#allocation5 + $0x68] sm:$0xff]  ;;  %v1451_v9 = vld [vmem:[#allocation5 + $0xa0] sm:$0xff]  ;;  %v1450_v12 = vld [vmem:[#allocation5 + $0x98] sm:$0xff]  ;;  %v1723_v3 = vmov 0   ;;  %s1972_s15 = scalar_select %p326_p1, %s1785_s28, 1 }
  0x38   : > { %v1435_v10 = vld [vmem:[#allocation5 + $0x20] sm:$0xff]  ;;  %v1434_v13 = vld [vmem:[#allocation5 + $0x18] sm:$0xff]  ;;  %v1449_v15 = vld [vmem:[#allocation5 + $0x90] sm:$0xff]  ;;  %1542 = vset.pattern.permute.xlu2 %v1723_v3  ;;  %1543 = vset.pattern.permute.xlu0 %v1723_v3  ;;  %s1103_s27 = sshll.u32 %s325_s11, 4  ;;  %s1105_s13 = sshll.u32 %s1102_s14, 4  ;;  %s2047_s27 = int_to_ptr.vmem [resolvable:$true] %s1103_s27  ;;  %s1106_s13 = int_to_ptr.hbm [resolvable:$true] %s1105_s13 }
  0x39   : > { %641 = vmatpush.bf16.msra.mxu3 %v1453_v2  ;;  %v1443_v11 = vld [vmem:[#allocation5 + $0x60] sm:$0xff]  ;;  %v1442_v14 = vld [vmem:[#allocation5 + $0x58] sm:$0xff]  ;;  %v1433_v16 = vld [vmem:[#allocation5 + $0x10] sm:$0xff]  ;;  %s1430_s16 = sshll.u32 %s1972_s15, 3  ;;  %s1466_s10 = smul.u32 96, %s1972_s15 }
  0x3a   : > { %615 = vmatpush.bf16.msra.mxu0 %v1437_v4  ;;  %v1441_v17 = vld [vmem:[#allocation5 + $0x50] sm:$0xff]  ;;  %v1448_v18 = vld [vmem:[#allocation5 + $0x88] sm:$0xff]  ;;  %v1447_v24 = vld [vmem:[#allocation5 + $0x80] sm:$0xff]  ;;  %v875_v4 = vsel %vm717_vm0, 1065369472, %v1723_v3  ;;  %s330_s20 = scalar_lea.vmem %s2102_s4, %s1430_s16  ;;  %s1088_s15 = scalar_lea.sflag [#allocation4], %s1861_s30 }
  0x3b   : > { %628 = vmatpush.bf16.msra.mxu1 %v1445_v5  ;;  %v339_v19 = vld [vmem:[%s1867_s1 + $0x8] sm:$0xff]  ;;  %v338_v21 = vld [vmem:[%s1867_s1] sm:$0xff]  ;;  %s2040_s28 = scalar_lea.vmem %s2103_s5, %s1466_s10  ;;  %s1659_s16 = sshra.s32 %s1106_s13, 4  ;;  %s1660_s16 = int_to_ptr.hbm [resolvable:$true] %s1659_s16 }
  0x3c   : > { %v1432_v20 = vld [vmem:[#allocation5 + $0x8] sm:$0xff]  ;;  %v412_v23 = vunpack.c.l.b16 %v339_v19  ;;  %v410_v25 = vunpack.c.l.b16 %v338_v21  ;;  %v1462_v26 = vld [vmem:[#allocation5 + $0xf8] sm:$0xff]  ;;  %v1431_v27 = vld [vmem:[#allocation5] sm:$0xff]  ;;  %v411_v28 = vunpack.c.h.b16 %v338_v21  ;;  %v413_v39 = vunpack.c.h.b16 %v339_v19  ;;  %s1661_s17 = scalar_lea.hbm %s1660_s16, 16  ;;  %s1665_s9 = scalar_lea.hbm %s2104_s6, 32 }
  0x3d   : > { %642 = vmatpush.bf16.msra.mxu3 %v1452_v6  ;;  %v1440_v22 = vld [vmem:[#allocation5 + $0x48] sm:$0xff]  ;;  %v1439_v29 = vld [vmem:[#allocation5 + $0x40] sm:$0xff]  ;;  %v1461_v32 = vld [vmem:[#allocation5 + $0xf0] sm:$0xff]  ;;  %p1662_p3 = scmp.ne.s32.totalorder %s1660_s16, %s1661_s17  ;;  %p1666_p7 = scmp.lt.s32.totalorder %s1660_s16, %s2104_s6 }
  0x3e   : > { %616 = vmatpush.bf16.msra.mxu0 %v1436_v7  ;;  %v1879_v30 = vpack.c.b16 %v412_v23, %v412_v23  ;;  %v414_v31 = vpack.c.b16 %v410_v25, %v410_v25  ;;  %v415_v33 = vpack.c.b16 %v411_v28, %v411_v28  ;;  %v1460_v34 = vld [vmem:[#allocation5 + $0xe8] sm:$0xff]  ;;  %v1459_v35 = vld [vmem:[#allocation5 + $0xe0] sm:$0xff]  ;;  %v1458_v36 = vld [vmem:[#allocation5 + $0xd8] sm:$0xff]  ;;  %v417_v41 = vpack.c.b16 %v413_v39, %v413_v39  ;;  %p1667_p8 = scmp.lt.s32.totalorder %s1665_s9, %s1661_s17 }
  0x3f   : > { %629 = vmatpush.bf16.msra.mxu1 %v1444_v8  ;;  %v1457_v37 = vld [vmem:[#allocation5 + $0xd0] sm:$0xff]  ;;  %v1456_v38 = vld [vmem:[#allocation5 + $0xc8] sm:$0xff]  ;;  %v1455_v40 = vld [vmem:[#allocation5 + $0xc0] sm:$0xff]  ;;  %p1663_p5 = pnand %p1662_p3, %p1830_p4 }
  0x40   : > { %v1544_v48 = vld [vmem:[%s2100_s2] ss:$0 sm:$0xff]  ;;  %v722_v59 = vsel %vm717_vm0, %v415_v33, 0  ;;  %v719_v60 = vsel %vm717_vm0, %v414_v31, 0  ;;  %v728_v61 = vsel %vm717_vm0, %v417_v41, 0  ;;  %p1668_p9 = por %p1667_p8, %p1666_p7 }
  0x41   : > { %643 = vmatpush.bf16.msra.mxu3 %v1451_v9  ;;  %1465 = vmatpush.bf16.msra.mxu2 %v719_v60  ;;  %v725_v9 = vsel %vm717_vm0, %v1879_v30, 0  ;;  %p1664_p12 = pneg %p1663_p5 }
  0x42   : > { %617 = vmatpush.bf16.msra.mxu0 %v1435_v10 }
  0x43   : > { %630 = vmatpush.bf16.msra.mxu1 %v1443_v11  ;;  %p1669_p10 = pnand %p1668_p9, %p1664_p12 }
  0x45   : > { %644 = vmatpush.bf16.msra.mxu3 %v1450_v12  ;;  %809 = vmatpush.bf16.msrb.mxu2 %v725_v9 }
  0x46   : > { %618 = vmatpush.bf16.msra.mxu0 %v1434_v13 }
  0x47   : > { %631 = vmatpush.bf16.msra.mxu1 %v1442_v14 }
  0x49   : > { %645 = vmatpush.bf16.msra.mxu3 %v1449_v15 }
  0x4a   : > { %619 = vmatpush.bf16.msra.mxu0 %v1433_v16 }
  0x4b   : > { %632 = vmatpush.bf16.msra.mxu1 %v1441_v17 }
  0x4d   : > { %646 = vmatpush.bf16.msra.mxu3 %v1448_v18 }
  0x4e   : > { %620 = vmatpush.bf16.msra.mxu0 %v1432_v20 }
  0x4f   : > { %633 = vmatpush.bf16.msra.mxu1 %v1440_v22 }
  0x51   : > { %647 = vmatpush.bf16.msra.mxu3 %v1447_v24 }
  0x52   : > { %621 = vmatpush.bf16.msra.mxu0 %v1431_v27 }
  0x53   : > { %634 = vmatpush.bf16.msra.mxu1 %v1439_v29 }
  0x54   : > { %648 = vmatmul.bf16.vlgmr.msra.gmra.mxu3 %v1879_v30 }
  0x55   : > { %653 = vmatpush.bf16.msrb.mxu3 %v1462_v26  ;;  %622 = vmatmul.bf16.vlgmr.msra.gmra.mxu0 %v414_v31 }
  0x56   : > { %635 = vmatmul.bf16.vlgmr.msra.gmra.mxu1 %v415_v33  ;;  %737 = vmatpush.bf16.msrb.mxu0 %v719_v60 }
  0x57   : > { %773 = vmatpush.bf16.msrb.mxu1 %v722_v59 }
  0x59   : > { %654 = vmatpush.bf16.msrb.mxu3 %v1461_v32 }
  0x5a   : > { %884 = vmatpush.bf16.msra.mxu0 %v875_v4 }
  0x5d   : > { %655 = vmatpush.bf16.msrb.mxu3 %v1460_v34 }
  0x61   : > { %656 = vmatpush.bf16.msrb.mxu3 %v1459_v35 }
  0x65   : > { %657 = vmatpush.bf16.msrb.mxu3 %v1458_v36 }
  0x69   : > { %658 = vmatpush.bf16.msrb.mxu3 %v1457_v37 }
  0x6d   : > { %659 = vmatpush.bf16.msrb.mxu3 %v1456_v38 }
  0x71   : > { %660 = vmatpush.bf16.msrb.mxu3 %v1455_v40 }
  0x74   : > { %661 = vmatmul.bf16.vlgmr.msrb.gmra.mxu3 %v417_v41 }
  0x75   : > { %845 = vmatpush.bf16.msra.mxu3 %v728_v61 }
  0xd2   : > { %v623_v42 = vpop.f32.mrf.mxu0 }
  0xd3   : > { %v636_v43 = vpop.f32.mrf.mxu1  ;;  %v624_v49 = vadd.f32 %v1544_v48, %v623_v42 }
  0xd5   : > { %v637_v50 = vadd.f32 %v636_v43, %v624_v49 }
  0xd7   : > { %v649_v44 = vpop.f32.mrf.mxu3 }
  0xd8   : > { %v650_v51 = vadd.f32 %v649_v44, %v637_v50 }
  0xda   : > { %v625_v45 = vpop.f32.mrf.mxu0 }
  0xdb   : > { %v638_v46 = vpop.f32.mrf.mxu1 }
  0xdf   : > { %v651_v47 = vpop.f32.mrf.mxu3 }
  0xf7   : > { %v662_v52 = vpop.f32.mrf.mxu3 }
  0xf8   : > { %v663_v53 = vadd.f32 %v662_v52, %v650_v51 }
  0xfa   : > { %666 = vmax.xlane.f32.xlu0 %v663_v53 }
  0xff   : > { %v664_v54 = vpop.f32.mrf.mxu3 }
 0x16d   : > { %v667_v55 = vpop.xlane.xlu0 %666 }
 0x16e   : > { %v668_v56 = vsub.f32 %v663_v53, %v667_v55 }
 0x170   : > { %v669_v57 = vmul.f32 1.442695, %v668_v56 }
 0x172   : > { %1545 = vpow2.f32 %v669_v57 }
 0x178   : > { %v1546_v58 = vpop.eup %1545 }
 0x179   : > { %671 = vadd.xlane.f32.xlu0 %v1546_v58 }
 0x1ec   : > { %v672_v62 = vpop.xlane.xlu0 %671 }
 0x1ed   : > { %1547 = vrcp.f32 %v672_v62 }
 0x1f3   : > { %v1548_v63 = vpop.eup %1547 }
 0x1f4   : > { %v674_v0 = vmul.f32 %v1548_v63, %v1546_v58 }
 0x1f6   : > { %v675_v1 = vpack.c.bf16 %v674_v0, %v674_v0 }
 0x1f8   : > { %676 = vxpose.xlu1.c.b16.start.end [1/1] (short) %v675_v1, 128  ;;  %v1064_v2 = vsel %vm717_vm0, %v675_v1, 0 }
 0x1f9   : > { %1073 = vmatpush.bf16.msra.mxu1 %v1064_v2 }
 0x24b   : > { %1541 = vset.pattern.permute.xlu1 %v1723_v3 }
 0x2a4   : > { %v684_v5 = vpop.trf.xlu1 }
 0x2a5   : > { %1379 = vmatmul.msk.bf16.vlgmr.msrb.gmra.mxu0 %vm692_vm1, %v684_v5  ;;  %1387 = vmatmul.msk.bf16.vlgmr.msrb.gmra.mxu1 %vm692_vm1, %v684_v5 }
 0x2a6   : > { %1403 = vmatmul.msk.bf16.vlgmr.msra.gmra.mxu3 %vm692_vm1, %v684_v5 }
 0x2b4   : > { %v685_v6 = vpop.trf.xlu1 }
 0x2b5   : > { %1380 = vmatmul.msk.bf16.gmra.mxu0 %vm692_vm1, %v685_v6  ;;  %1388 = vmatmul.msk.bf16.gmra.mxu1 %vm692_vm1, %v685_v6 }
 0x2b6   : > { %1404 = vmatmul.msk.bf16.gmra.mxu3 %vm692_vm1, %v685_v6 }
 0x2c4   : > { %v686_v7 = vpop.trf.xlu1 }
 0x2c5   : > { %1381 = vmatmul.msk.bf16.gmra.mxu0 %vm692_vm1, %v686_v7  ;;  %1389 = vmatmul.msk.bf16.gmra.mxu1 %vm692_vm1, %v686_v7 }
 0x2c6   : > { %1405 = vmatmul.msk.bf16.gmra.mxu3 %vm692_vm1, %v686_v7 }
 0x2d4   : > { %v687_v8 = vpop.trf.xlu1 }
 0x2d5   : > { %1382 = vmatmul.msk.bf16.vlgmr.msra.gmra.mxu2 %vm692_vm1, %v687_v8  ;;  %1411 = vmatmul.msk.bf16.vlgmr.msra.gmra.mxu0 %vm692_vm1, %v684_v5 }
 0x2d6   : > { %1390 = vmatmul.msk.bf16.gmra.mxu1 %vm692_vm1, %v687_v8  ;;  %1406 = vmatmul.msk.bf16.gmra.mxu3 %vm692_vm1, %v687_v8 }
 0x2e4   : > { %v688_v10 = vpop.trf.xlu1 }
 0x2e5   : > { %1383 = vmatmul.msk.bf16.gmra.mxu2 %vm692_vm1, %v688_v10  ;;  %1412 = vmatmul.msk.bf16.gmra.mxu0 %vm692_vm1, %v685_v6 }
 0x2e6   : > { %1391 = vmatmul.msk.bf16.gmra.mxu1 %vm692_vm1, %v688_v10  ;;  %1407 = vmatmul.msk.bf16.gmra.mxu3 %vm692_vm1, %v688_v10 }
 0x2f4   : > { %v689_v11 = vpop.trf.xlu1 }
 0x2f5   : > { %1384 = vmatmul.msk.bf16.gmra.mxu2 %vm692_vm1, %v689_v11  ;;  %1413 = vmatmul.msk.bf16.gmra.mxu0 %vm692_vm1, %v686_v7 }
 0x2f6   : > { %1392 = vmatmul.msk.bf16.gmra.mxu1 %vm692_vm1, %v689_v11  ;;  %1408 = vmatmul.msk.bf16.gmra.mxu3 %vm692_vm1, %v689_v11 }
 0x304   : > { %v1913_v12 = vpop.trf.xlu1 }
 0x305   : > { %1385 = vmatmul.msk.bf16.gmra.mxu2 %vm692_vm1, %v1913_v12  ;;  %1414 = vmatmul.msk.bf16.gmra.mxu0 %vm692_vm1, %v687_v8 }
 0x306   : > { %1393 = vmatmul.msk.bf16.gmra.mxu1 %vm692_vm1, %v1913_v12  ;;  %1409 = vmatmul.msk.bf16.gmra.mxu3 %vm692_vm1, %v1913_v12 }
 0x314   : > { %v1922_v13 = vpop.trf.xlu1 }
 0x315   : > { %1386 = vmatmul.msk.bf16.gmra.mxu2 %vm692_vm1, %v1922_v13  ;;  %1415 = vmatmul.msk.bf16.gmra.mxu0 %vm692_vm1, %v688_v10 }
 0x316   : > { %1394 = vmatmul.msk.bf16.gmra.mxu1 %vm692_vm1, %v1922_v13  ;;  %1410 = vmatmul.msk.bf16.gmra.mxu3 %vm692_vm1, %v1922_v13 }
 0x322   : > { %v1931_v14 = vpop.f32.mrf.mxu0  ;;  %v1933_v15 = vpop.f32.mrf.mxu1 }
 0x325   : > { %1395 = vmatmul.msk.bf16.vlgmr.msrb.gmra.mxu2 %vm692_vm1, %v684_v5  ;;  %1416 = vmatmul.msk.bf16.gmra.mxu0 %vm692_vm1, %v689_v11 }
 0x329   : > { %v1937_v16 = vpop.f32.mrf.mxu3 }
 0x32a   : > { %v1939_v17 = vpop.f32.mrf.mxu0  ;;  %v1941_v18 = vpop.f32.mrf.mxu1 }
 0x331   : > { %v1943_v19 = vpop.f32.mrf.mxu3 }
 0x332   : > { %v1945_v20 = vpop.f32.mrf.mxu0  ;;  %v1947_v21 = vpop.f32.mrf.mxu1 }
 0x335   : > { %1396 = vmatmul.msk.bf16.gmra.mxu2 %vm692_vm1, %v685_v6  ;;  %1417 = vmatmul.msk.bf16.gmra.mxu0 %vm692_vm1, %v1913_v12 }
 0x339   : > { %v1952_v22 = vpop.f32.mrf.mxu3 }
 0x33a   : > { %v746_v23 = vpop.f32.mrf.mxu0  ;;  %v782_v24 = vpop.f32.mrf.mxu1 }
 0x33b   : > { %v915_v23 = vld [vmem:[#allocation7 + $0x10] sm:$0xff]  ;;  %v916_v24 = vld [vmem:[#allocation7 + $0x18] sm:$0xff] }
 0x341   : > { %v854_v25 = vpop.f32.mrf.mxu3 }
 0x342   : > { %v748_v26 = vpop.f32.mrf.mxu0  ;;  %v784_v27 = vpop.f32.mrf.mxu1 }
 0x345   : > { %1397 = vmatmul.msk.bf16.gmra.mxu2 %vm692_vm1, %v686_v7  ;;  %1418 = vmatmul.msk.bf16.gmra.mxu0 %vm692_vm1, %v1922_v13 }
 0x349   : > { %v856_v28 = vpop.f32.mrf.mxu3 }
 0x34a   : > { %v749_v29 = vpop.f32.mrf.mxu0  ;;  %v785_v30 = vpop.f32.mrf.mxu1 }
 0x351   : > { %v857_v31 = vpop.f32.mrf.mxu3 }
 0x352   : > { %v886_v32 = vpop.f32.mrf.mxu0 }
 0x353   : > { %927 = vperm.xlu2 %1542, %v886_v32   ;;  %v787_v33 = vpop.f32.mrf.mxu1 }
 0x355   : > { %1398 = vmatmul.msk.bf16.gmra.mxu2 %vm692_vm1, %v687_v8 }
 0x358   : > { %v751_v34 = vpop.f32.mrf.mxu2 }
 0x359   : > { %v859_v35 = vpop.f32.mrf.mxu3  ;;  %v917_v34 = vld [vmem:[#allocation7 + $0x20] sm:$0xff] }
 0x35a   : > { %v888_v36 = vpop.f32.mrf.mxu0 }
 0x35b   : > { %932 = vperm.xlu2 %1542, %v888_v36   ;;  %v788_v37 = vpop.f32.mrf.mxu1 }
 0x35c   : > { %v918_v37 = vld [vmem:[#allocation7 + $0x28] sm:$0xff] }
 0x360   : > { %v752_v38 = vpop.f32.mrf.mxu2 }
 0x361   : > { %v860_v39 = vpop.f32.mrf.mxu3  ;;  %v920_v38 = vld [vmem:[#allocation7 + $0x38] sm:$0xff] }
 0x362   : > { %v891_v40 = vpop.f32.mrf.mxu0 }
 0x363   : > { %937 = vperm.xlu1 %1541, %v891_v40   ;;  %v790_v41 = vpop.f32.mrf.mxu1 }
 0x365   : > { %1399 = vmatmul.msk.bf16.gmra.mxu2 %vm692_vm1, %v688_v10 }
 0x368   : > { %v754_v42 = vpop.f32.mrf.mxu2 }
 0x369   : > { %v862_v43 = vpop.f32.mrf.mxu3 }
 0x36a   : > { %v893_v44 = vpop.f32.mrf.mxu0 }
 0x36b   : > { %v791_v45 = vpop.f32.mrf.mxu1 }
 0x370   : > { %v755_v46 = vpop.f32.mrf.mxu2 }
 0x371   : > { %v863_v47 = vpop.f32.mrf.mxu3 }
 0x372   : > { %v895_v48 = vpop.f32.mrf.mxu0 }
 0x373   : > { %v793_v49 = vpop.f32.mrf.mxu1 }
 0x375   : > { %1400 = vmatmul.msk.bf16.gmra.mxu2 %vm692_vm1, %v689_v11  ;;  %v913_v11 = vld [vmem:[#allocation7] sm:$0xff] }
 0x378   : > { %v757_v50 = vpop.f32.mrf.mxu2 }
 0x379   : > { %v865_v51 = vpop.f32.mrf.mxu3 }
 0x37a   : > { %v896_v52 = vpop.f32.mrf.mxu0 }
 0x37b   : > { %v794_v53 = vpop.f32.mrf.mxu1 }
 0x380   : > { %v758_v54 = vpop.f32.mrf.mxu2 }
 0x381   : > { %v866_v55 = vpop.f32.mrf.mxu3 }
 0x382   : > { %v898_v56 = vpop.f32.mrf.mxu0 }
 0x383   : > { %v796_v57 = vpop.f32.mrf.mxu1  ;;  %v1463_v56 = vld [vmem:[%s330_s20] sm:$0xff] }
 0x384   : > { %1423 = vmatmul.msk.bf16.vlgmr.msra.gmra.mxu1 %vm692_vm1, %v1463_v56 }
 0x385   : > { %1401 = vmatmul.msk.bf16.gmra.mxu2 %vm692_vm1, %v1913_v12  ;;  %v914_v12 = vld [vmem:[#allocation7 + $0x8] sm:$0xff] }
 0x388   : > { %v760_v58 = vpop.f32.mrf.mxu2 }
 0x389   : > { %v868_v59 = vpop.f32.mrf.mxu3 }
 0x38a   : > { %v899_v60 = vpop.f32.mrf.mxu0 }
 0x38b   : > { %v797_v61 = vpop.f32.mrf.mxu1 }
 0x390   : > { %v761_v62 = vpop.f32.mrf.mxu2 }
 0x391   : > { %v869_v63 = vpop.f32.mrf.mxu3 }
 0x392   : > { %v901_v0 = vpop.f32.mrf.mxu0 }
 0x393   : > { %v799_v1 = vpop.f32.mrf.mxu1  ;;  %v921_v0 = vld [vmem:[#allocation7 + $0x40] sm:$0x3] }
 0x394   : > { %v922_v1 = vld [vmem:[#allocation7 + $0x48] sm:$0x3] }
 0x395   : > { %1402 = vmatmul.msk.bf16.gmra.mxu2 %vm692_vm1, %v1922_v13 }
 0x398   : > { %v763_v2 = vpop.f32.mrf.mxu2 }
 0x399   : > { %v871_v3 = vpop.f32.mrf.mxu3  ;;  %v923_v2 = vld [vmem:[#allocation7 + $0x50] sm:$0x3] }
 0x39a   : > { %v902_v4 = vpop.f32.mrf.mxu0  ;;  %v924_v3 = vld [vmem:[#allocation7 + $0x58] sm:$0x3] }
 0x39b   : > { %v800_v5 = vpop.f32.mrf.mxu1 }
 0x3a0   : > { %v764_v6 = vpop.f32.mrf.mxu2 }
 0x3a1   : > { %v872_v7 = vpop.f32.mrf.mxu3 }
 0x3a2   : > { %v904_v8 = vpop.f32.mrf.mxu0 }
 0x3a8   : > { %v811_v9 = vpop.f32.mrf.mxu2 }
 0x3aa   : > { %v905_v10 = vpop.f32.mrf.mxu0 }
 0x3ad   : > { %v928_v25 = vpop.permute.xlu2 %927 }
 0x3ae   : > { %v940_v26 = vmul.f32 %v928_v25, %v913_v11  ;;  %v941_v27 = vmul.f32 %v928_v25, %v914_v12  ;;  %v942_v28 = vmul.f32 %v928_v25, %v915_v23  ;;  %v943_v13 = vmul.f32 %v928_v25, %v916_v24 }
 0x3b0   : > { %v1966_v29 = vsub.f32 %v1931_v14, %v940_v26  ;;  %v1969_v30 = vsub.f32 %v1933_v15, %v941_v27  ;;  %v813_v31 = vpop.f32.mrf.mxu2  ;;  %v1974_v32 = vsub.f32 %v811_v9, %v942_v28  ;;  %v919_v14 = vld [vmem:[#allocation7 + $0x30] sm:$0xff]  ;;  %v1981_v15 = vsub.f32 %v1937_v16, %v943_v13 }
 0x3b2   : > { %v907_v33 = vpop.f32.mrf.mxu0  ;;  %v964_v35 = vmul.f32 %v1966_v29, %v1966_v29  ;;  %v965_v36 = vmul.f32 %v1969_v30, %v1969_v30  ;;  %v966_v41 = vmul.f32 %v1974_v32, %v1974_v32  ;;  %v967_v46 = vmul.f32 %v1981_v15, %v1981_v15 }
 0x3b4   : > { %v976_v39 = vadd.f32 %v965_v36, %v964_v35 }
 0x3b5   : > { %v933_v40 = vpop.permute.xlu2 %932 }
 0x3b6   : > { %v944_v42 = vmul.f32 %v933_v40, %v917_v34  ;;  %v945_v43 = vmul.f32 %v933_v40, %v918_v37  ;;  %v946_v44 = vmul.f32 %v933_v40, %v919_v14  ;;  %v947_v45 = vmul.f32 %v933_v40, %v920_v38 }
 0x3b7   : > { %v977_v47 = vadd.f32 %v976_v39, %v966_v41 }
 0x3b8   : > { %v1992_v16 = vsub.f32 %v1939_v17, %v944_v42  ;;  %v1995_v48 = vsub.f32 %v1941_v18, %v945_v43  ;;  %v816_v49 = vpop.f32.mrf.mxu2  ;;  %v1997_v50 = vsub.f32 %v813_v31, %v946_v44  ;;  %v2000_v53 = vsub.f32 %v1943_v19, %v947_v45 }
 0x3b9   : > { %v978_v51 = vadd.f32 %v977_v47, %v967_v46 }
 0x3ba   : > { %v908_v52 = vpop.f32.mrf.mxu0  ;;  %v968_v54 = vmul.f32 %v1992_v16, %v1992_v16  ;;  %v969_v55 = vmul.f32 %v1995_v48, %v1995_v48  ;;  %v970_v17 = vmul.f32 %v1997_v50, %v1997_v50  ;;  %v971_v57 = vmul.f32 %v2000_v53, %v2000_v53 }
 0x3bb   : > { %979 = vadd.xlane.f32.xlu0 %v978_v51 }
 0x3bc   : > { %v981_v18 = vadd.f32 %v969_v55, %v968_v54 }
 0x3be   : > { %v982_v58 = vadd.f32 %v981_v18, %v970_v17 }
 0x3c0   : > { %v818_v19 = vpop.f32.mrf.mxu2  ;;  %v983_v59 = vadd.f32 %v982_v58, %v971_v57 }
 0x3c2   : > { %v910_v60 = vpop.f32.mrf.mxu0  ;;  %984 = vadd.xlane.f32.xlu2 %v983_v59 }
 0x3c8   : > { %v820_v61 = vpop.f32.mrf.mxu2 }
 0x3ca   : > { %v911_v62 = vpop.f32.mrf.mxu0 }
 0x3d0   : > { %v821_v63 = vpop.f32.mrf.mxu2 }
 0x3d5   : > { %v938_v4 = vpop.permute.xlu1 %937 }
 0x3d6   : > { %v948_v5 = vmul.f32 %v938_v4, %v921_v0  ;;  %v949_v6 = vmul.f32 %v938_v4, %v922_v1  ;;  %v950_v7 = vmul.f32 %v938_v4, %v923_v2  ;;  %v951_v8 = vmul.f32 %v938_v4, %v924_v3 }
 0x3d8   : > { %v2012_v9 = vsub.f32 %v1945_v20, %v948_v5  ;;  %v2015_v10 = vsub.f32 %v1947_v21, %v949_v6  ;;  %v2017_v11 = vsub.f32 %v816_v49, %v950_v7  ;;  %v2020_v12 = vsub.f32 %v1952_v22, %v951_v8  ;;  %v823_v23 = vpop.f32.mrf.mxu2 }
 0x3da   : > { %v972_v24 = vmul.f32 %v2012_v9, %v2012_v9  ;;  %v973_v25 = vmul.f32 %v2015_v10, %v2015_v10  ;;  %v974_v20 = vmul.f32 %v2017_v11, %v2017_v11  ;;  %v975_v21 = vmul.f32 %v2020_v12, %v2020_v12 }
 0x3dc   : > { %v987_v26 = vsel %vm986_vm2, %v972_v24, 0.0  ;;  %v988_v27 = vsel %vm986_vm2, %v973_v25, 0.0  ;;  %v990_v13 = vsel %vm986_vm2, %v974_v20, 0.0  ;;  %v992_v33 = vsel %vm986_vm2, %v975_v21, 0.0 }
 0x3dd   : > { %v989_v28 = vadd.f32 %v988_v27, %v987_v26 }
 0x3df   : > { %v991_v22 = vadd.f32 %v990_v13, %v989_v28 }
 0x3e0   : > { %v824_v31 = vpop.f32.mrf.mxu2 }
 0x3e1   : > { %v993_v34 = vadd.f32 %v992_v33, %v991_v22 }
 0x3e3   : > { %994 = vadd.xlane.f32.xlu0 %v993_v34 }
 0x3e8   : > { %v826_v35 = vpop.f32.mrf.mxu2 }
 0x3f0   : > { %v827_v36 = vpop.f32.mrf.mxu2 }
 0x3f8   : > { %v829_v37 = vpop.f32.mrf.mxu2 }
 0x400   : > { %v830_v14 = vpop.f32.mrf.mxu2 }
 0x401   : > { %v1075_v56 = vpop.f32.mrf.mxu1 }
 0x402   : > { %1080 = vst [vmem:[%s325_s11] sm:$0xff] %v1075_v56 }
 0x408   : > { %v832_v38 = vpop.f32.mrf.mxu2 }
 0x409   : > { %v1077_v63 = vpop.f32.mrf.mxu1 }
 0x40a   : > { %1081 = vst [vmem:[%s325_s11 + $0x8] sm:$0xff] %v1077_v63 }
 0x410   : > { %v833_v39 = vpop.f32.mrf.mxu2 }
 0x418   : > { %v835_v40 = vpop.f32.mrf.mxu2 }
 0x420   : > { %v836_v41 = vpop.f32.mrf.mxu2 }
 0x42e   : > { %v980_v42 = vpop.xlane.xlu0 %979 }
 0x42f   : > { %v996_v43 = vmax.f32 %v980_v42, 1e-24 }
 0x431   : > { %1549 = vrsqrt.f32 %v996_v43  ;;  %vm1005_vm4 = vweird.f32 %v996_v43 }
 0x435   : > { %v985_v44 = vpop.xlane.xlu2 %984 }
 0x436   : > { %v997_v45 = vmax.f32 %v985_v44, 1e-24 }
 0x437   : > { %v1550_v46 = vpop.eup %1549 }
 0x438   : > { %v1000_v47 = vmul.f32 %v1550_v46, %v996_v43  ;;  %1551 = vrsqrt.f32 %v997_v45  ;;  %vm1006_vm3 = vweird.f32 %v1550_v46  ;;  %vm1015_vm7 = vweird.f32 %v997_v45 }
 0x439   : > { %vm1007_vm5 = vmor %vm1005_vm4, %vm1006_vm3 }
 0x43a   : > { %v1001_v49 = vmul.f32 %v1550_v46, %v1000_v47 }
 0x43c   : > { %v1002_v51 = vmul.f32 0.5, %v1001_v49 }
 0x43e   : > { %v1552_v52 = vpop.eup %1551  ;;  %v1003_v54 = vsub.f32 1.5, %v1002_v51 }
 0x43f   : > { %v1010_v55 = vmul.f32 %v1552_v52, %v997_v45  ;;  %vm1016_vm6 = vweird.f32 %v1552_v52 }
 0x440   : > { %v1004_v17 = vmul.f32 %v1550_v46, %v1003_v54  ;;  %vm1017_vm8 = vmor %vm1015_vm7, %vm1016_vm6 }
 0x441   : > { %v1011_v18 = vmul.f32 %v1552_v52, %v1010_v55 }
 0x442   : > { %v1008_v57 = vsel %vm1007_vm5, %v1550_v46, %v1004_v17 }
 0x443   : > { %v1029_v58 = vmul.f32 %v1008_v57, %v1966_v29  ;;  %v1030_v19 = vmul.f32 %v1008_v57, %v1969_v30  ;;  %v1031_v59 = vmul.f32 %v1008_v57, %v1974_v32  ;;  %v1032_v60 = vmul.f32 %v1008_v57, %v1981_v15 }
 0x444   : > { %v1012_v61 = vmul.f32 0.5, %v1011_v18 }
 0x445   : > { %1041 = vst [vmem:[%s2040_s28] sm:$0xff] %v1029_v58 }
 0x446   : > { %1042 = vst [vmem:[%s2040_s28 + $0x8] sm:$0xff] %v1030_v19  ;;  %v1013_v62 = vsub.f32 1.5, %v1012_v61 }
 0x447   : > { %1043 = vst [vmem:[%s2040_s28 + $0x10] sm:$0xff] %v1031_v59 }
 0x448   : > { %1044 = vst [vmem:[%s2040_s28 + $0x18] sm:$0xff] %v1032_v60  ;;  %v1014_v29 = vmul.f32 %v1552_v52, %v1013_v62 }
 0x44a   : > { %v1018_v30 = vsel %vm1017_vm8, %v1552_v52, %v1014_v29 }
 0x44b   : > { %1672 = shalt.err (!%p1669_p10)
}
 0x44c   : > { %s1724_s30 = smov 128   ;;  %s1725_s11 = smov 8   ;;  %v1033_v32 = vmul.f32 %v1018_v30, %v1992_v16  ;;  %v1034_v15 = vmul.f32 %v1018_v30, %v1995_v48  ;;  %v1035_v0 = vmul.f32 %v1018_v30, %v1997_v50  ;;  %v1036_v1 = vmul.f32 %v1018_v30, %v2000_v53 }
 0x44d   : > { %1477 = dma.vmem_to_hbm [thread:$0]  (%p1830_p4), %s2047_s27, 256, %s1106_s13, %s1088_s15, %s1724_s30, %s1724_s30, %s1725_s11  }
 0x44e   : > { %1045 = vst [vmem:[%s2040_s28 + $0x20] sm:$0xff] %v1033_v32 }
 0x44f   : > { %1046 = vst [vmem:[%s2040_s28 + $0x28] sm:$0xff] %v1034_v15 }
 0x450   : > { %1047 = vst [vmem:[%s2040_s28 + $0x30] sm:$0xff] %v1035_v0 }
 0x451   : > { %1048 = vst [vmem:[%s2040_s28 + $0x38] sm:$0xff] %v1036_v1 }
 0x456   : > { %v995_v2 = vpop.xlane.xlu0 %994 }
 0x457   : > { %v998_v3 = vmax.f32 %v995_v2, 1e-24 }
 0x459   : > { %1553 = vrsqrt.f32 %v998_v3  ;;  %vm1025_vm10 = vweird.f32 %v998_v3 }
 0x45f   : > { %v1554_v4 = vpop.eup %1553 }
 0x460   : > { %v1020_v5 = vmul.f32 %v1554_v4, %v998_v3  ;;  %vm1026_vm9 = vweird.f32 %v1554_v4 }
 0x461   : > { %vm1027_vm11 = vmor %vm1025_vm10, %vm1026_vm9 }
 0x462   : > { %v1021_v16 = vmul.f32 %v1554_v4, %v1020_v5 }
 0x464   : > { %v1022_v6 = vmul.f32 0.5, %v1021_v16 }
 0x466   : > { %v1023_v48 = vsub.f32 1.5, %v1022_v6 }
 0x468   : > { %v1024_v50 = vmul.f32 %v1554_v4, %v1023_v48 }
 0x46a   : > { %v1028_v53 = vsel %vm1027_vm11, %v1554_v4, %v1024_v50 }
 0x46b   : > { %v1037_v7 = vmul.f32 %v1028_v53, %v2012_v9  ;;  %v1038_v8 = vmul.f32 %v1028_v53, %v2015_v10  ;;  %v1039_v23 = vmul.f32 %v1028_v53, %v2017_v11  ;;  %v1040_v24 = vmul.f32 %v1028_v53, %v2020_v12 }
 0x46d   : > { %1049 = vst [vmem:[%s2040_s28 + $0x40] sm:$0x3] %v1037_v7 }
 0x46e   : > { %1050 = vst [vmem:[%s2040_s28 + $0x48] sm:$0x3] %v1038_v8 }
 0x46f   : > { %1051 = vst [vmem:[%s2040_s28 + $0x50] sm:$0x3] %v1039_v23 }
 0x470   : > { %1052 = vst [vmem:[%s2040_s28 + $0x58] sm:$0x3] %v1040_v24 }
 0x471 PF: > { %s1128_s7 = sand.u32 1, %s1703_s21   ;;  %p2113_p4 = scmp.ge.s32.totalorder %s1715_s24, 2 }
 0x472   : > { %s1129_s26 = scalar_lea.sflag [#allocation4], %s1128_s7 }
 0x473   : > { %p1491_p13 = pnand %p2113_p4, %p1834_p6 }
 0x475   : > { %p1492_p11 = pneg %p1491_p13 }
 0x477   : > { %1698 = dma.done.wait (%p1492_p11), %s1129_s26, 256  }
 0x478   : > { %1700 = vsyncadd (%p1492_p11), %s1129_s26, 4294967040  ;;  %p21_p0 = scmp.ge.s32.totalorder %s1804_s18, 4   ;;  %s2114_s21 = smov %s1707_s22 }
 0x479   : > { %s2115_s22 = smov %s1711_s23  ;;  %s2116_s23 = smov %s1815_s25 }
 0x47a   : > { %s2117_s24 = smov %s1804_s18  ;;  %23 = sbr.rel (!%p21_p0) target bundleno = 8 (0x8), region = 108 }
 0x47f   :  { %1135 = vsyncpa [#allocation3], 1 }
 0x480   :  { %1137 = vsyncpa [#allocation3 + $0x1], 1 }
 0x481   :  { %1138 = vsyncpa [#allocation6], 1 }
 0x482   :  { %1139 = vsyncpa [#allocation4], 1 }
 0x483   :  { %1141 = vsyncpa [#allocation4 + $0x1], 1 }

</bundles_post_ra>
